<compile_context>
chip_gen: v7x
topology: tpu7x:2x2x1
jax: 0.10.0
libtpu: 0.0.40
codegen_flags: <defaults>
</compile_context>

<pallas_src>
import jax
import jax.numpy as jnp
from jax import lax
from jax.experimental import pallas as pl
from jax.experimental.pallas import tpu as pltpu

NEG_SLOPE = 0.01      # F.leaky_relu default negative_slope
SUBLANE = 8           # f32 sublane count
CHUNK_B = 256         # in-kernel batch sub-chunk (rows per unrolled loop step)


def _leaky_relu(x):
    return jnp.where(x > 0, x, NEG_SLOPE * x)


def _round_up(n, m):
    return (n + m - 1) // m * m


def dqn_kernel(x_ref, w1_ref, b1_ref, w2_ref, b2_ref, w3_ref, b3_ref,
               wh_ref, bh_ref, out_ref):
    """One batch tile per grid step.

    x_ref   : [tb, input_size]                  (pipelined per grid step)
    w*_ref  : [in, out] bf16, b*_ref [1, out]   (constant index_map -> resident)
    wh_ref  : [out_pad, 64] bf16, bh_ref [out_pad, 1] f32
    out_ref : [chunks_per_tile, out_pad, ck]    (batch-on-lanes head output)
    """
    cdt = w1_ref.dtype                        # bf16 MXU operand dtype
    n_chunks, _, ck = out_ref.shape

    # Load weights/biases once per tile; loop-invariant below.
    w1, w2, w3, wh = w1_ref[...], w2_ref[...], w3_ref[...], wh_ref[...]
    b1, b2, b3, bh = b1_ref[...], b2_ref[...], b3_ref[...], bh_ref[...]

    def chunk(c, carry):
        row0 = pl.multiple_of(c * ck, ck)
        x = x_ref[pl.ds(row0, ck), :].astype(cdt)           # [ck, in]
        h = jnp.dot(x, w1, preferred_element_type=jnp.float32) + b1
        h = _leaky_relu(h)                                  # f32 VPU math
        h = jnp.dot(h.astype(cdt), w2, preferred_element_type=jnp.float32) + b2
        h = _leaky_relu(h)
        h = jnp.dot(h.astype(cdt), w3, preferred_element_type=jnp.float32) + b3
        h = _leaky_relu(h)
        # Head in batch-on-lanes form: q[a, b] = sum_k wh[a, k] * h[b, k].
        q = lax.dot_general(wh, h.astype(cdt),
                            dimension_numbers=(((1,), (1,)), ((), ())),
                            preferred_element_type=jnp.float32) + bh
        out_ref[c] = q.astype(out_ref.dtype)                # lane-dense store
        return carry

    lax.fori_loop(0, n_chunks, chunk, 0, unroll=True)


def dqn_forward(x, params, num_actions, *, tile_b=2048, chunk_b=CHUNK_B):
    """x: [batch, input_size] float32. Returns [batch, num_actions] f32 Q-values."""
    batch, input_size = x.shape
    h1 = params["w1"].shape[1]
    h2 = params["w2"].shape[1]
    h3 = params["w3"].shape[1]
    out_pad = params["wh"].shape[0]

    # ---- Batch tiling -------------------------------------------------------
    if batch >= chunk_b:
        ck = chunk_b
        tb = min(_round_up(tile_b, ck), _round_up(batch, ck))
    else:
        tb = _round_up(batch, SUBLANE)
        ck = tb
    padded_batch = _round_up(batch, tb)
    n_tiles = padded_batch // tb
    # v7x megacore: prefer >= 2 grid steps when the batch allows it so both
    # TensorCores get work (no effect on single-TC v5e/v6e).
    if n_tiles == 1 and tb >= 2 * ck:
        tb = max(ck, _round_up(tb // 2, ck))
        padded_batch = _round_up(batch, tb)
        n_tiles = padded_batch // tb
    chunks_per_tile = tb // ck
    n_chunks = padded_batch // ck

    if padded_batch != batch:
        x = jnp.pad(x, ((0, padded_batch - batch), (0, 0)))

    args = (x,
            params["w1"], params["b1"],
            params["w2"], params["b2"],
            params["w3"], params["b3"],
            params["wh"], params["bh"])

    # Weights/biases: full-array blocks, constant index_map -> VMEM-resident.
    def const_spec(a):
        return pl.BlockSpec(a.shape, lambda i, _nd=a.ndim: (0,) * _nd)

    in_specs = [pl.BlockSpec((tb, input_size), lambda i: (i, 0))]
    in_specs += [const_spec(a) for a in args[1:]]
    out_spec = pl.BlockSpec((chunks_per_tile, out_pad, ck), lambda i: (i, 0, 0))

    flops = 2 * padded_batch * (input_size * h1 + h1 * h2 + h2 * h3 + h3 * out_pad)
    bytes_accessed = (int(x.size) * x.dtype.itemsize
                      + sum(int(a.size) * a.dtype.itemsize for a in args[1:])
                      + padded_batch * out_pad * 4)

    out = pl.pallas_call(
        dqn_kernel,
        out_shape=jax.ShapeDtypeStruct((n_chunks, out_pad, ck), jnp.float32),
        grid=(n_tiles,),
        in_specs=in_specs,
        out_specs=out_spec,
        compiler_params=pltpu.CompilerParams(
            dimension_semantics=(pltpu.PARALLEL,)),
        cost_estimate=pl.CostEstimate(
            flops=flops, transcendentals=0, bytes_accessed=bytes_accessed),
    )(*args)

    # Un-transpose the tiny batch-on-lanes result:
    # [n_chunks, out_pad, ck] -> [padded_batch, out_pad] -> [batch, num_actions].
    out = out.transpose(0, 2, 1).reshape(padded_batch, out_pad)
    return out[:batch, :num_actions]


def init_params(key, input_size, num_actions, *, weight_dtype=jnp.bfloat16):
    """PyTorch nn.Linear-style init (U[-1/sqrt(fan_in), 1/sqrt(fan_in)]).

    linear1..3 weights stored transposed [in, out] in bf16 (f32 accumulation in
    the kernel); biases stay f32 [1, out].  The head stays in PyTorch [out, in]
    orientation with its output rows zero-padded to a multiple of 8 sublanes;
    its bias is [out_pad, 1] f32.
    """
    dims = [(input_size, 64), (64, 128), (128, 64), (64, num_actions)]
    names = ["1", "2", "3", "h"]
    params = {}
    for (fan_in, fan_out), n in zip(dims, names):
        key, kw, kb = jax.random.split(key, 3)
        bound = 1.0 / (fan_in ** 0.5)
        w = jax.random.uniform(kw, (fan_in, fan_out), jnp.float32, -bound, bound)
        b = jax.random.uniform(kb, (fan_out,), jnp.float32, -bound, bound)
        if n == "h":
            out_pad = _round_up(fan_out, SUBLANE)
            w = jnp.pad(w.T, ((0, out_pad - fan_out), (0, 0)))   # [out_pad, in]
            b = jnp.pad(b, (0, out_pad - fan_out))[:, None]      # [out_pad, 1]
        else:
            b = b[None, :]                                       # [1, out]
        params[f"w{n}"] = w.astype(weight_dtype)
        params[f"b{n}"] = b                                      # f32
    return params


def dqn_reference(x, params, num_actions):
    """Pure-JAX reference mirroring the kernel arithmetic (bf16 operands,
    f32 accumulation)."""
    cdt = params["w1"].dtype
    h = x
    for n in ["1", "2", "3"]:
        h = jnp.dot(h.astype(cdt), params[f"w{n}"],
                    preferred_element_type=jnp.float32) + params[f"b{n}"]
        h = _leaky_relu(h)
    q = jnp.dot(h.astype(cdt), params["wh"].T,
                preferred_element_type=jnp.float32) + params["bh"].T
    return q[:, :num_actions]


if __name__ == "__main__":
    input_size = 16
    num_actions = 4

    key = jax.random.PRNGKey(0)
    key, kx = jax.random.split(key)
    params = init_params(key, input_size, num_actions)

    # Small case: batch not a multiple of 8 -> single minimal tile + padding.
    x_small = jax.random.normal(kx, (20, input_size), jnp.float32)
    out_small = jax.block_until_ready(dqn_forward(x_small, params, num_actions))
    ref_small = dqn_reference(x_small, params, num_actions)
    assert out_small.shape == (20, num_actions)
    assert jnp.allclose(out_small, ref_small, atol=1e-2, rtol=1e-2), "small mismatch"

    # Larger case: exercises the multi-step batch grid (grid=(2,)) and the
    # in-kernel unrolled chunk loop (2 chunks of 256 rows per tile) + padding.
    key, kx2 = jax.random.split(key)
    x_big = jax.random.normal(kx2, (600, input_size), jnp.float32)
    out_big = jax.block_until_ready(
        dqn_forward(x_big, params, num_actions, tile_b=512))
    ref_big = dqn_reference(x_big, params, num_actions)
    assert out_big.shape == (600, num_actions)
    assert jnp.allclose(out_big, ref_big, atol=1e-2, rtol=1e-2), "big mismatch"

    print("KERNEL_OK")
</pallas_src>

<mosaic_0001>
module attributes {stable_mosaic.version = 11 : i64} {
  func.func @dqn_kernel(%arg0: i32, %arg1: memref<24x16xf32, #tpu.memory_space<vmem>>, %arg2: memref<16x64xbf16, #tpu.memory_space<vmem>>, %arg3: memref<1x64xf32, #tpu.memory_space<vmem>>, %arg4: memref<64x128xbf16, #tpu.memory_space<vmem>>, %arg5: memref<1x128xf32, #tpu.memory_space<vmem>>, %arg6: memref<128x64xbf16, #tpu.memory_space<vmem>>, %arg7: memref<1x64xf32, #tpu.memory_space<vmem>>, %arg8: memref<8x64xbf16, #tpu.memory_space<vmem>>, %arg9: memref<8x1xf32, #tpu.memory_space<vmem>>, %arg10: memref<1x8x24xf32, #tpu.memory_space<vmem>>) attributes {dimension_semantics = [#tpu.dimension_semantics<parallel>], iteration_bounds = array<i64: 1>, scalar_prefetch = 0 : i64, scratch_operands = 0 : i64, tpu.core_type = #tpu.core_type<tc>, window_params = [{transform_indices = @transform_0, window_bounds = array<i64: 24, 16>}, {pipeline_mode = #tpu.pipeline_mode<synchronous>, transform_indices = @transform_1, window_bounds = array<i64: 16, 64>}, {pipeline_mode = #tpu.pipeline_mode<synchronous>, transform_indices = @transform_2, window_bounds = array<i64: 1, 64>}, {pipeline_mode = #tpu.pipeline_mode<synchronous>, transform_indices = @transform_3, window_bounds = array<i64: 64, 128>}, {pipeline_mode = #tpu.pipeline_mode<synchronous>, transform_indices = @transform_4, window_bounds = array<i64: 1, 128>}, {pipeline_mode = #tpu.pipeline_mode<synchronous>, transform_indices = @transform_5, window_bounds = array<i64: 128, 64>}, {pipeline_mode = #tpu.pipeline_mode<synchronous>, transform_indices = @transform_6, window_bounds = array<i64: 1, 64>}, {pipeline_mode = #tpu.pipeline_mode<synchronous>, transform_indices = @transform_7, window_bounds = array<i64: 8, 64>}, {pipeline_mode = #tpu.pipeline_mode<synchronous>, transform_indices = @transform_8, window_bounds = array<i64: 8, 1>}, {transform_indices = @transform_9, window_bounds = array<i64: 1, 8, 24>}]} {
    %c0 = arith.constant 0 : index
    %c0_0 = arith.constant 0 : index
    %0 = vector.load %arg2[%c0, %c0_0] : memref<16x64xbf16, #tpu.memory_space<vmem>>, vector<16x64xbf16>
    %c0_1 = arith.constant 0 : index
    %c0_2 = arith.constant 0 : index
    %1 = vector.load %arg4[%c0_1, %c0_2] : memref<64x128xbf16, #tpu.memory_space<vmem>>, vector<64x128xbf16>
    %c0_3 = arith.constant 0 : index
    %c0_4 = arith.constant 0 : index
    %2 = vector.load %arg6[%c0_3, %c0_4] : memref<128x64xbf16, #tpu.memory_space<vmem>>, vector<128x64xbf16>
    %c0_5 = arith.constant 0 : index
    %c0_6 = arith.constant 0 : index
    %3 = vector.load %arg8[%c0_5, %c0_6] : memref<8x64xbf16, #tpu.memory_space<vmem>>, vector<8x64xbf16>
    %c0_7 = arith.constant 0 : index
    %c0_8 = arith.constant 0 : index
    %4 = vector.load %arg3[%c0_7, %c0_8] : memref<1x64xf32, #tpu.memory_space<vmem>>, vector<1x64xf32>
    %c0_9 = arith.constant 0 : index
    %c0_10 = arith.constant 0 : index
    %5 = vector.load %arg5[%c0_9, %c0_10] : memref<1x128xf32, #tpu.memory_space<vmem>>, vector<1x128xf32>
    %c0_11 = arith.constant 0 : index
    %c0_12 = arith.constant 0 : index
    %6 = vector.load %arg7[%c0_11, %c0_12] : memref<1x64xf32, #tpu.memory_space<vmem>>, vector<1x64xf32>
    %c0_13 = arith.constant 0 : index
    %c0_14 = arith.constant 0 : index
    %7 = vector.load %arg9[%c0_13, %c0_14] : memref<8x1xf32, #tpu.memory_space<vmem>>, vector<8x1xf32>
    %c0_i32 = arith.constant 0 : i32
    %c24_i32 = arith.constant 24 : i32
    %8 = arith.muli %c0_i32, %c24_i32 : i32
    %9 = tpu.assume_multiple %8, 24 : i32
    %10 = arith.index_cast %9 : i32 to index
    %c0_15 = arith.constant 0 : index
    %11 = vector.load %arg1[%10, %c0_15] : memref<24x16xf32, #tpu.memory_space<vmem>>, vector<24x16xf32>
    %12 = arith.truncf %11 : vector<24x16xf32> to vector<24x16xbf16>
    %cst = arith.constant dense<0.000000e+00> : vector<24x64xf32>
    %13 = tpu.matmul %12, %0, %cst {dimension_numbers = #tpu.dot_dimension_numbers<[1], [0], [0], [1], [0, 0, 1, 1], [], []>} : vector<24x16xbf16>, vector<16x64xbf16>, vector<24x64xf32> -> vector<24x64xf32>
    %14 = vector.broadcast %4 : vector<1x64xf32> to vector<24x64xf32>
    %15 = arith.addf %13, %14 : vector<24x64xf32>
    %cst_16 = arith.constant 0.000000e+00 : f32
    %16 = vector.broadcast %cst_16 : f32 to vector<24x64xf32>
    %17 = arith.cmpf ogt, %15, %16 : vector<24x64xf32>
    %cst_17 = arith.constant 0.00999999977 : f32
    %18 = vector.broadcast %cst_17 : f32 to vector<24x64xf32>
    %19 = arith.mulf %18, %15 : vector<24x64xf32>
    %20 = arith.select %17, %15, %19 : vector<24x64xi1>, vector<24x64xf32>
    %21 = arith.truncf %20 : vector<24x64xf32> to vector<24x64xbf16>
    %cst_18 = arith.constant dense<0.000000e+00> : vector<24x128xf32>
    %22 = tpu.matmul %21, %1, %cst_18 {dimension_numbers = #tpu.dot_dimension_numbers<[1], [0], [0], [1], [0, 0, 1, 1], [], []>} : vector<24x64xbf16>, vector<64x128xbf16>, vector<24x128xf32> -> vector<24x128xf32>
    %23 = vector.broadcast %5 : vector<1x128xf32> to vector<24x128xf32>
    %24 = arith.addf %22, %23 : vector<24x128xf32>
    %cst_19 = arith.constant 0.000000e+00 : f32
    %25 = vector.broadcast %cst_19 : f32 to vector<24x128xf32>
    %26 = arith.cmpf ogt, %24, %25 : vector<24x128xf32>
    %cst_20 = arith.constant 0.00999999977 : f32
    %27 = vector.broadcast %cst_20 : f32 to vector<24x128xf32>
    %28 = arith.mulf %27, %24 : vector<24x128xf32>
    %29 = arith.select %26, %24, %28 : vector<24x128xi1>, vector<24x128xf32>
    %30 = arith.truncf %29 : vector<24x128xf32> to vector<24x128xbf16>
    %cst_21 = arith.constant dense<0.000000e+00> : vector<24x64xf32>
    %31 = tpu.matmul %30, %2, %cst_21 {dimension_numbers = #tpu.dot_dimension_numbers<[1], [0], [0], [1], [0, 0, 1, 1], [], []>} : vector<24x128xbf16>, vector<128x64xbf16>, vector<24x64xf32> -> vector<24x64xf32>
    %32 = vector.broadcast %6 : vector<1x64xf32> to vector<24x64xf32>
    %33 = arith.addf %31, %32 : vector<24x64xf32>
    %cst_22 = arith.constant 0.000000e+00 : f32
    %34 = vector.broadcast %cst_22 : f32 to vector<24x64xf32>
    %35 = arith.cmpf ogt, %33, %34 : vector<24x64xf32>
    %cst_23 = arith.constant 0.00999999977 : f32
    %36 = vector.broadcast %cst_23 : f32 to vector<24x64xf32>
    %37 = arith.mulf %36, %33 : vector<24x64xf32>
    %38 = arith.select %35, %33, %37 : vector<24x64xi1>, vector<24x64xf32>
    %39 = arith.truncf %38 : vector<24x64xf32> to vector<24x64xbf16>
    %cst_24 = arith.constant dense<0.000000e+00> : vector<8x24xf32>
    %40 = tpu.matmul %3, %39, %cst_24 {dimension_numbers = #tpu.dot_dimension_numbers<[1], [1], [0], [0], [0, 0, 1, 0], [], []>} : vector<8x64xbf16>, vector<24x64xbf16>, vector<8x24xf32> -> vector<8x24xf32>
    %41 = vector.broadcast %7 : vector<8x1xf32> to vector<8x24xf32>
    %42 = arith.addf %40, %41 : vector<8x24xf32>
    %43 = arith.index_cast %c0_i32 : i32 to index
    %c0_25 = arith.constant 0 : index
    %c0_26 = arith.constant 0 : index
    %44 = vector.load %arg10[%43, %c0_25, %c0_26] : memref<1x8x24xf32, #tpu.memory_space<vmem>>, vector<1x8x24xf32>
    %45 = vector.shape_cast %44 : vector<1x8x24xf32> to vector<8x24xf32>
    %46 = vector.shape_cast %42 : vector<8x24xf32> to vector<1x8x24xf32>
    tpu.vector_store %arg10[%43, %c0_25, %c0_26], %46 {strides = array<i32>} : memref<1x8x24xf32, #tpu.memory_space<vmem>>, vector<1x8x24xf32>,
    %c1_i32 = arith.constant 1 : i32
    return
  }
  func.func @transform_0(%arg0: i32) -> (i32, i32) {
    %c0_i32 = arith.constant 0 : i32
    %c0_i32_0 = arith.constant 0 : i32
    return %arg0, %c0_i32 : i32, i32
  }
  func.func @transform_1(%arg0: i32) -> (i32, i32) {
    %c0_i32 = arith.constant 0 : i32
    %c0_i32_0 = arith.constant 0 : i32
    %c0_i32_1 = arith.constant 0 : i32
    return %c0_i32, %c0_i32_0 : i32, i32
  }
  func.func @transform_2(%arg0: i32) -> (i32, i32) {
    %c0_i32 = arith.constant 0 : i32
    %c0_i32_0 = arith.constant 0 : i32
    %c0_i32_1 = arith.constant 0 : i32
    return %c0_i32, %c0_i32_0 : i32, i32
  }
  func.func @transform_3(%arg0: i32) -> (i32, i32) {
    %c0_i32 = arith.constant 0 : i32
    %c0_i32_0 = arith.constant 0 : i32
    %c0_i32_1 = arith.constant 0 : i32
    return %c0_i32, %c0_i32_0 : i32, i32
  }
  func.func @transform_4(%arg0: i32) -> (i32, i32) {
    %c0_i32 = arith.constant 0 : i32
    %c0_i32_0 = arith.constant 0 : i32
    %c0_i32_1 = arith.constant 0 : i32
    return %c0_i32, %c0_i32_0 : i32, i32
  }
  func.func @transform_5(%arg0: i32) -> (i32, i32) {
    %c0_i32 = arith.constant 0 : i32
    %c0_i32_0 = arith.constant 0 : i32
    %c0_i32_1 = arith.constant 0 : i32
    return %c0_i32, %c0_i32_0 : i32, i32
  }
  func.func @transform_6(%arg0: i32) -> (i32, i32) {
    %c0_i32 = arith.constant 0 : i32
    %c0_i32_0 = arith.constant 0 : i32
    %c0_i32_1 = arith.constant 0 : i32
    return %c0_i32, %c0_i32_0 : i32, i32
  }
  func.func @transform_7(%arg0: i32) -> (i32, i32) {
    %c0_i32 = arith.constant 0 : i32
    %c0_i32_0 = arith.constant 0 : i32
    %c0_i32_1 = arith.constant 0 : i32
    return %c0_i32, %c0_i32_0 : i32, i32
  }
  func.func @transform_8(%arg0: i32) -> (i32, i32) {
    %c0_i32 = arith.constant 0 : i32
    %c0_i32_0 = arith.constant 0 : i32
    %c0_i32_1 = arith.constant 0 : i32
    return %c0_i32, %c0_i32_0 : i32, i32
  }
  func.func @transform_9(%arg0: i32) -> (i32, i32, i32) {
    %c0_i32 = arith.constant 0 : i32
    %c0_i32_0 = arith.constant 0 : i32
    %c0_i32_1 = arith.constant 0 : i32
    return %arg0, %c0_i32, %c0_i32_0 : i32, i32, i32
  }
}

</mosaic_0001>

<bundles_post_ra>
// kernel: tpu_custom_call.1
= control target key start
LH: loop header
LB: loop body
LE: loop exit
PB: predicated region body
PF: predicated region fallthrough
CT: control target
= control target key end

     0   :  { %vm82_vm0 = vcmask 130048   ;;  %s692_s0 = inlined_call_operand.vmem [shape: f32[24,16], index: 0, kind: input, shape index: {}]   ;;  %s693_s1 = inlined_call_operand.vmem [shape: bf16[16,64], index: 1, kind: input, shape index: {}]   ;;  %s694_s2 = inlined_call_operand.vmem [shape: f32[1,64], index: 2, kind: input, shape index: {}]   ;;  %s695_s3 = inlined_call_operand.vmem [shape: bf16[64,128], index: 3, kind: input, shape index: {}]   ;;  %s696_s4 = inlined_call_operand.vmem [shape: f32[1,128], index: 4, kind: input, shape index: {}]   ;;  %s697_s5 = inlined_call_operand.vmem [shape: bf16[128,64], index: 5, kind: input, shape index: {}]   ;;  %s698_s6 = inlined_call_operand.vmem [shape: f32[1,64], index: 6, kind: input, shape index: {}]   ;;  %s699_s7 = inlined_call_operand.vmem [shape: bf16[8,64], index: 7, kind: input, shape index: {}]   ;;  %s700_s8 = inlined_call_operand.vmem [shape: f32[8,1], index: 8, kind: input, shape index: {}]   ;;  %s701_s9 = inlined_call_operand.hbm [shape: f32[1,8,24], index: 9, kind: output, shape index: {}]  }
   0x1   :  { %v521_v0 = vld [vmem:[%s693_s1] sm:$0xff]   ;;  %v66_v2 = vld [vmem:[%s692_s0 + $0x8] sm:$0xff]  ;;  %v67_v3 = vld [vmem:[%s692_s0 + $0x10] sm:$0xff] }
   0x2   :  { %v65_v1 = vld [vmem:[%s692_s0] sm:$0xff]  ;;  %470 = vmatprep.subr.bf16.mxu0 %v521_v0  ;;  %v69_v5 = vpack.c.bf16 %v67_v3, %v67_v3 }
   0x3   :  { %v68_v4 = vpack.c.bf16 %v66_v2, %v65_v1  ;;  %v522_v6 = vld [vmem:[%s695_s3] sm:$0xff]   ;;  %471 = vmatpush3.bf16.msra.mxu0 %v521_v0 }
   0x4   :  { %476 = vmatprep.subr.bf16.mxu1 %v522_v6 }
   0x5   :  { %472 = vmatprep.mubr.msk.bf16.mxu0 %vm82_vm0, %v68_v4  ;;  %477 = vmatpush3.bf16.msra.mxu1 %v522_v6 }
   0x6   :  { %473 = vmatmul.mubr.msk.bf16.vlgmr.msra.gmra.mrb[0].mxu0 %vm82_vm0, %v69_v5 }
   0x7   :  { %14 = vsyncpa [#allocation3], 0  ;;  %v523_v7 = vld [vmem:[%s695_s3 + $0x8] sm:$0xff]   ;;  %v524_v8 = vld [vmem:[%s695_s3 + $0x10] sm:$0xff]   ;;  %vm178_vm4 = vcmask 523264   ;;  %v558_v50 = vmov 0.0  }
   0x8   :  { %478 = vmatprep.subr.bf16.mxu1 %v523_v7  ;;  %v525_v9 = vld [vmem:[%s695_s3 + $0x18] sm:$0xff]   ;;  %v526_v10 = vld [vmem:[%s697_s5] sm:$0xff]   ;;  %v527_v11 = vld [vmem:[%s697_s5 + $0x8] sm:$0xff]   ;;  %vm559_vm8 = vmmov 0   ;;  %v560_v52 = vmov 0   ;;  %s561_s20 = smov [#allocation2]  }
   0x9   :  { %479 = vmatpush3.bf16.msra.mxu1 %v523_v7  ;;  %488 = vmatprep.subr.bf16.mxu0 %v526_v10  ;;  %v528_v12 = vld [vmem:[%s697_s5 + $0x10] sm:$0xff]   ;;  %v529_v13 = vld [vmem:[%s697_s5 + $0x18] sm:$0xff]   ;;  %v530_v14 = vld [vmem:[%s697_s5 + $0x20] sm:$0xff]   ;;  %s419_s21 = sshll.u32 %s561_s20, 4  ;;  %vm411_vm12 = vcmask 195584   ;;  %s420_s21 = int_to_ptr.vmem [resolvable:$true] %s419_s21 }
   0xa   :  { %480 = vmatprep.subr.bf16.mxu1 %v524_v8  ;;  %489 = vmatpush3.bf16.msra.mxu0 %v526_v10  ;;  %v427_v15 = vld [vmem:[%s694_s2] ss:$0 sm:$0xff]  ;;  %v531_v31 = vld [vmem:[%s697_s5 + $0x28] sm:$0xff]   ;;  %v532_v32 = vld [vmem:[%s697_s5 + $0x30] sm:$0xff]   ;;  %s534_s22 = scalar_lea.vmem %s420_s21, 128  ;;  %p539_p1 = scmp.lt.s32.totalorder %s420_s21, %s420_s21 }
   0xb   :  { %490 = vmatprep.subr.bf16.mxu0 %v527_v11  ;;  %v533_v33 = vld [vmem:[%s697_s5 + $0x38] sm:$0xff]   ;;  %v431_v34 = vld [vmem:[%s696_s4] ss:$0 sm:$0xff]  ;;  %520 = vset.pattern.permute.xlu0 %v560_v52  ;;  %p535_p0 = scmp.ne.s32.totalorder %s420_s21, %s534_s22  ;;  %p540_p2 = scmp.lt.s32.totalorder %s534_s22, %s534_s22 }
   0xc   :  { %v64_v51 = vld [vmem:[%s700_s8] sm:$0xff] }
   0xd   :  { %481 = vmatpush3.bf16.msra.mxu1 %v524_v8  ;;  %359 = vperm.xlu0 %520, %v64_v51   ;;  %v438_v53 = vld [vmem:[%s698_s6] ss:$0 sm:$0xff]  ;;  %p541_p3 = por %p540_p2, %p539_p1 }
   0xe   :  { %482 = vmatprep.subr.bf16.mxu1 %v525_v9  ;;  %491 = vmatpush3.bf16.msra.mxu0 %v527_v11  ;;  %v60_v7 = vld [vmem:[%s699_s7] sm:$0xf] }
   0xf   :  { %492 = vmatprep.subr.bf16.mxu0 %v528_v12  ;;  %p542_p4 = pnand %p541_p3, %p535_p0 }
  0x11   :  { %483 = vmatpush3.bf16.msra.mxu1 %v525_v9 }
  0x12   :  { %493 = vmatpush3.bf16.msra.mxu0 %v528_v12  ;;  %508 = vmatprep.subr.bf16.mxu1 %v558_v50 }
  0x13   :  { %494 = vmatprep.subr.bf16.mxu0 %v529_v13 }
  0x16   :  { %495 = vmatpush3.bf16.msra.mxu0 %v529_v13 }
  0x17   :  { %496 = vmatprep.subr.bf16.mxu0 %v530_v14 }
  0x1a   :  { %497 = vmatpush3.bf16.msra.mxu0 %v530_v14 }
  0x1b   :  { %498 = vmatprep.subr.bf16.mxu0 %v531_v31 }
  0x1e   :  { %499 = vmatpush3.bf16.msra.mxu0 %v531_v31 }
  0x1f   :  { %500 = vmatprep.subr.bf16.mxu0 %v532_v32 }
  0x22   :  { %501 = vmatpush3.bf16.msra.mxu0 %v532_v32 }
  0x23   :  { %502 = vmatprep.subr.bf16.mxu0 %v533_v33 }
  0x26   :  { %503 = vmatpush3.bf16.msra.mxu0 %v533_v33 }
  0x8c   :  { %v360_v8 = vpop.permute.xlu0 %359 }
  0xd9   :  { %v474_v16 = vpop.f32.mrb[0].mxu0 }
  0xda   :  { %v132_v17 = vadd.f32 %v474_v16, %v427_v15  ;;  %v123_v18 = vpop.f32.mrb[1].mxu0 }
  0xdb   :  { %v124_v19 = vadd.f32 %v427_v15, %v123_v18  ;;  %v475_v20 = vpop.f32.mrb[2].mxu0 }
  0xdc   :  { %v142_v21 = vmul.f32 0.01, %v132_v17  ;;  %v126_v22 = vpop.f32.mrb[3].mxu0  ;;  %vm139_vm1 = vcmp.gt.f32.partialorder %v132_v17, 0.0 }
  0xdd   :  { %v140_v23 = vmul.f32 0.01, %v124_v19  ;;  %v127_v24 = vadd.f32 %v427_v15, %v126_v22  ;;  %vm137_vm2 = vcmp.gt.f32.partialorder %v124_v19, 0.0 }
  0xde   :  { %v145_v26 = vsel %vm139_vm1, %v132_v17, %v142_v21 }
  0xdf   :  { %v141_v25 = vmul.f32 0.01, %v127_v24  ;;  %vm138_vm3 = vcmp.gt.f32.partialorder %v127_v24, 0.0  ;;  %v143_v27 = vsel %vm137_vm2, %v124_v19, %v140_v23  ;;  %v147_v30 = vpack.c.bf16 %v145_v26, %v145_v26 }
  0xe1   :  { %v144_v28 = vsel %vm138_vm3, %v127_v24, %v141_v25 }
  0xe2   :  { %v146_v29 = vpack.c.bf16 %v144_v28, %v143_v27 }
  0xe4   :  { %484 = vmatprep.mubr.msk.bf16.mxu1 %vm178_vm4, %v146_v29 }
  0xe5   :  { %485 = vmatmul.mubr.msk.bf16.vlgmr.msra.gmra.mrb[0].mxu1 %vm178_vm4, %v147_v30 }
  0xe6   :  { %512 = vmatprep.mubr.msk.bf16.mxu1 %vm559_vm8, %v558_v50 }
 0x1b8   :  { %v486_v35 = vpop.f32.mrb[0].mxu1 }
 0x1b9   :  { %v228_v36 = vadd.f32 %v486_v35, %v431_v34  ;;  %v219_v37 = vpop.f32.mrb[1].mxu1 }
 0x1ba   :  { %v220_v38 = vadd.f32 %v431_v34, %v219_v37  ;;  %v487_v39 = vpop.f32.mrb[2].mxu1 }
 0x1bb   :  { %v238_v40 = vmul.f32 0.01, %v228_v36  ;;  %v222_v41 = vpop.f32.mrb[3].mxu1  ;;  %vm235_vm5 = vcmp.gt.f32.partialorder %v228_v36, 0.0 }
 0x1bc   :  { %v236_v42 = vmul.f32 0.01, %v220_v38  ;;  %v223_v43 = vadd.f32 %v431_v34, %v222_v41  ;;  %vm233_vm6 = vcmp.gt.f32.partialorder %v220_v38, 0.0 }
 0x1bd   :  { %v241_v45 = vsel %vm235_vm5, %v228_v36, %v238_v40 }
 0x1be   :  { %vm234_vm7 = vcmp.gt.f32.partialorder %v223_v43, 0.0  ;;  %v237_v44 = vmul.f32 0.01, %v223_v43  ;;  %v239_v46 = vsel %vm233_vm6, %v220_v38, %v236_v42  ;;  %v243_v49 = vpack.c.bf16 %v241_v45, %v241_v45 }
 0x1c0   :  { %v240_v47 = vsel %vm234_vm7, %v223_v43, %v237_v44 }
 0x1c1   :  { %v242_v48 = vpack.c.bf16 %v240_v47, %v239_v46 }
 0x1c3   :  { %504 = vmatprep.mubr.bf16.mxu0 %v242_v48 }
 0x1c4   :  { %505 = vmatmul.mubr.bf16.vlgmr.msra.gmra.mrb[4].mxu0 %v243_v49 }
 0x297   :  { %v506_v54 = vpop.f32.mrb[4].mxu0 }
 0x298   :  { %v332_v55 = vpop.f32.mrb[5].mxu0  ;;  %v341_v59 = vadd.f32 %v506_v54, %v438_v53 }
 0x299   :  { %v333_v56 = vadd.f32 %v438_v53, %v332_v55  ;;  %v507_v57 = vpop.f32.mrb[6].mxu0 }
 0x29a   :  { %v335_v58 = vpop.f32.mrb[7].mxu0  ;;  %v351_v63 = vmul.f32 0.01, %v341_v59  ;;  %vm348_vm11 = vcmp.gt.f32.partialorder %v341_v59, 0.0 }
 0x29b   :  { %v349_v60 = vmul.f32 0.01, %v333_v56  ;;  %v336_v61 = vadd.f32 %v438_v53, %v335_v58  ;;  %vm346_vm9 = vcmp.gt.f32.partialorder %v333_v56, 0.0 }
 0x29c   :  { %v354_v4 = vsel %vm348_vm11, %v341_v59, %v351_v63 }
 0x29d   :  { %vm347_vm10 = vcmp.gt.f32.partialorder %v336_v61, 0.0  ;;  %v350_v62 = vmul.f32 0.01, %v336_v61  ;;  %v352_v0 = vsel %vm346_vm9, %v333_v56, %v349_v60  ;;  %v356_v5 = vpack.c.bf16 %v354_v4, %v354_v4 }
 0x29f   :  { %v353_v1 = vsel %vm347_vm10, %v336_v61, %v350_v62  ;;  %v369_v6 = vsel %vm178_vm4, %v356_v5, 0 }
 0x2a0   :  { %v355_v2 = vpack.c.bf16 %v353_v1, %v352_v0 }
 0x2a2   :  { %v366_v3 = vsel %vm178_vm4, %v355_v2, 0 }
 0x2a3   :  { %509 = vmatpush3.bf16.xpose.msra.mxu1 %v366_v3 }
 0x2a4   :  { %510 = vmatprep.subr.bf16.mxu1 %v558_v50 }
 0x2ab   :  { %511 = vmatpush3.bf16.xpose.msra.mxu1 %v369_v6 }
 0x2b2   :  { %513 = vmatmul.mubr.msk.bf16.vlgmr.msra.gmra.mrb[4].mxu1 %vm178_vm4, %v60_v7 }
 0x385   :  { %v405_v9 = vpop.f32.mrb[4].mxu1 }
 0x386   :  { %v406_v10 = vadd.f32 %v405_v9, %v360_v8  ;;  %v514_v11 = vpop.f32.mrb[5].mxu1 }
 0x387   :  { %v408_v12 = vpop.f32.mrb[6].mxu1 }
 0x388   :  { %v515_v13 = vpop.f32.mrb[7].mxu1  ;;  %412 = vst.msk [vmem:[#allocation2] sm:$0xff] %vm411_vm12, %v406_v10 }
 0x389   :  { %545 = shalt.err (!%p542_p4)
}
 0x38a   :  { %s546_s24 = scalar_lea.hbm %s701_s9, 128 }
 0x38b   :  { %p547_p5 = scmp.ne.s32.totalorder %s701_s9, %s546_s24  ;;  %p550_p6 = scmp.lt.u32.totalorder %s546_s24, %s701_s9 }
 0x38d   :  { %p552_p7 = pnand %p550_p6, %p547_p5 }
 0x38f   :  { %555 = shalt.err (!%p552_p7)
}
 0x390   :  { %422 = dma.vmem_to_hbm [thread:$0]  %s420_s21, 128, %s701_s9, [#allocation3]  }
 0x391   :  { %556 = dma.done.wait [#allocation3], 128  }
 0x392   :  { %557 = vsyncadd [#allocation3], 4294967168 }
 0x393   :  { %426 = vsyncpa [#allocation3], 1 }

</bundles_post_ra>
